<compile_context>
chip_gen: v5e
topology: v5e:2x2
jax: 0.10.0
libtpu: 0.0.40
codegen_flags: <defaults>
</compile_context>

<pallas_src>
import jax
import jax.numpy as jnp
from jax.experimental import pallas as pl
from jax.experimental.pallas import tpu as pltpu


def _lora_kernel(x_ref, w_ref, b_ref, a_ref, wb_ref, o_ref, acc_ref):
    # x_ref:   (tm, tk)  activation tile
    # w_ref:   (tk, tn)  base weight tile (pre-transposed to (K, N))
    # b_ref:   (1, tn)   bias tile
    # a_ref:   (tm, rp)  precomputed alpha * (x @ W_a^T) row tile
    # wb_ref:  (rp, tn)  LoRA up-projection tile (pre-transposed to (r, N))
    # o_ref:   (tm, tn)  output tile
    # acc_ref: (tm, tn)  f32 accumulator, resident across the k (reduction) axis
    k = pl.program_id(2)

    @pl.when(k == 0)
    def _():
        acc_ref[...] = jnp.zeros_like(acc_ref)

    acc_ref[...] += jnp.dot(x_ref[...], w_ref[...],
                            preferred_element_type=jnp.float32)

    @pl.when(k == pl.num_programs(2) - 1)
    def _():
        lora = jnp.dot(a_ref[...], wb_ref[...],
                       preferred_element_type=jnp.float32)
        o_ref[...] = (acc_ref[...] + b_ref[...] + lora).astype(o_ref.dtype)


def _round_up(x, m):
    return ((x + m - 1) // m) * m


def _physical_vmem_bytes():
    try:
        return int(pltpu.get_tpu_info().vmem_capacity_bytes)
    except Exception:
        return 64 << 20  # conservative fallback (v7x-sized)


def linear_lora_forward(x, w_base, b_base, w_a, w_b, alpha, *,
                        tm_target=512, tn_target=256, tk_target=512):
    """LinearLoRA forward.

    x:      (B, S, in_features)
    w_base: (out_features, in_features)   -- torch nn.Linear layout
    b_base: (out_features,)
    w_a:    (r, in_features)
    w_b:    (out_features, r)
    """
    B, S, K = x.shape
    N, K2 = w_base.shape
    assert K == K2
    r = w_a.shape[0]
    M = B * S
    dtype = x.dtype

    # ---- tile sizes (tiles never exceed padded dims; dims pad UP to tiles) --
    tm = min(tm_target, _round_up(M, 8))
    tn = min(tn_target, _round_up(N, 128))
    tk = min(tk_target, _round_up(K, 128))
    Mp = _round_up(M, tm)
    Np = _round_up(N, tn)
    Kp = _round_up(K, tk)
    rp = _round_up(r, 8)   # sublane quantum only; zero padding is exact

    # ---- pad / lay out operands (one-time, amortized for constant weights) --
    x2d = x.reshape(M, K)
    if (Mp, Kp) != (M, K):
        x2d = jnp.zeros((Mp, Kp), dtype).at[:M, :K].set(x2d)

    # Base weight pre-transposed to (K, N) for the canonical MXU contraction.
    w_t = jnp.zeros((Kp, Np), w_base.dtype).at[:K, :N].set(w_base.T)

    b2d = jnp.zeros((1, Np), b_base.dtype).at[0, :N].set(b_base)

    # Hoisted LoRA down-projection (alpha folded), tiny XLA matmul: (M, r).
    a = jnp.dot(x.reshape(M, K), w_a.T, preferred_element_type=jnp.float32)
    a = (jnp.asarray(alpha, jnp.float32) * a).astype(dtype)
    a2d = jnp.zeros((Mp, rp), dtype).at[:M, :r].set(a)

    # LoRA up-projection pre-transposed to (r, N).
    wb_t = jnp.zeros((rp, Np), w_b.dtype).at[:r, :N].set(w_b.T)

    grid = (Mp // tm, Np // tn, Kp // tk)

    # ---- VMEM budget: double-buffered blocks (per-dtype) + f32 accumulator --
    isz = lambda dt: jnp.dtype(dt).itemsize
    blk_bytes = (2 * tm * tk * isz(dtype)            # x tile
                 + 2 * tk * tn * isz(w_base.dtype)   # W tile
                 + 2 * 1 * tn * isz(b_base.dtype)    # bias tile
                 + 2 * tm * rp * isz(dtype)          # a tile
                 + 2 * rp * tn * isz(w_b.dtype)      # W_b tile
                 + 2 * tm * tn * isz(dtype)          # out tile
                 + tm * tn * 4)                      # f32 accumulator
    vmem_cap = (_physical_vmem_bytes() * 3) // 4     # ~48 MiB v7x, ~96 MiB v5e/v6e
    vmem_limit = int(min(max(blk_bytes * 5 // 4 + (2 << 20), 16 << 20), vmem_cap))

    out2d = pl.pallas_call(
        _lora_kernel,
        out_shape=jax.ShapeDtypeStruct((Mp, Np), dtype),
        grid_spec=pltpu.PrefetchScalarGridSpec(
            num_scalar_prefetch=0,
            grid=grid,
            in_specs=[
                pl.BlockSpec((tm, tk), lambda i, j, k: (i, k)),   # x tile
                pl.BlockSpec((tk, tn), lambda i, j, k: (k, j)),   # W^T tile
                pl.BlockSpec((1, tn), lambda i, j, k: (0, j)),    # bias tile
                pl.BlockSpec((tm, rp), lambda i, j, k: (i, 0)),   # alpha*(x@W_a^T)
                pl.BlockSpec((rp, tn), lambda i, j, k: (0, j)),   # W_b^T tile
            ],
            out_specs=pl.BlockSpec((tm, tn), lambda i, j, k: (i, j)),
            scratch_shapes=[pltpu.VMEM((tm, tn), jnp.float32)],
        ),
        compiler_params=pltpu.CompilerParams(
            dimension_semantics=("parallel", "parallel", "arbitrary"),
            vmem_limit_bytes=vmem_limit,
        ),
    )(x2d, w_t, b2d, a2d, wb_t)

    return out2d[:M, :N].reshape(B, S, N)


def _reference(x, w_base, b_base, w_a, w_b, alpha):
    base = jnp.einsum("bsk,nk->bsn", x, w_base) + b_base
    down = jnp.einsum("bsk,rk->bsr", x, w_a)
    up = jnp.einsum("bsr,nr->bsn", down, w_b)
    return base + alpha * up


if __name__ == "__main__":
    # Small shapes consistent with the module's forward:
    # hidden_states: (batch=2, seq=8, in_features=32) -> (2, 8, out_features=32)
    B, S, IN, OUT, R = 2, 8, 32, 32, 8
    ALPHA = 16.0

    key = jax.random.PRNGKey(0)
    k_x, k_wb_base, k_bb, k_wa, k_wb_lora, k_x2 = jax.random.split(key, 6)

    x = jax.random.normal(k_x, (B, S, IN), dtype=jnp.float32)

    # Deterministic parameter init mirroring nn.Linear / LinearLoRA.__init__:
    w_base = jax.random.normal(k_wb_base, (OUT, IN), jnp.float32) * 0.05
    b_base = jax.random.normal(k_bb, (OUT,), jnp.float32) * 0.05
    w_a = jax.random.normal(k_wa, (R, IN), jnp.float32) * 0.05
    w_b = jnp.zeros((OUT, R), jnp.float32)  # w_b.weight.data.fill_(0.0)

    # 1) Module's actual init (w_b == 0).
    out = linear_lora_forward(x, w_base, b_base, w_a, w_b, ALPHA)
    out = jax.block_until_ready(out)
    ref = _reference(x, w_base, b_base, w_a, w_b, ALPHA)
    assert jnp.allclose(out, ref, atol=1e-5, rtol=1e-5)

    # 2) Nonzero w_b exercises the full LoRA path.
    w_b_nz = jax.random.normal(k_wb_lora, (OUT, R), jnp.float32) * 0.05
    out_nz = linear_lora_forward(x, w_base, b_base, w_a, w_b_nz, ALPHA)
    out_nz = jax.block_until_ready(out_nz)
    ref_nz = _reference(x, w_base, b_base, w_a, w_b_nz, ALPHA)
    assert jnp.allclose(out_nz, ref_nz, atol=1e-4, rtol=1e-4)

    # 3) Odd, non-aligned shapes exercise the padding / multi-tile path.
    B2, S2, IN2, OUT2, R2 = 2, 5, 48, 40, 4
    kx2, kw2, kb2, ka2, kbb2 = jax.random.split(k_x2, 5)
    x2 = jax.random.normal(kx2, (B2, S2, IN2), jnp.float32)
    w_base2 = jax.random.normal(kw2, (OUT2, IN2), jnp.float32) * 0.05
    b_base2 = jax.random.normal(kb2, (OUT2,), jnp.float32) * 0.05
    w_a2 = jax.random.normal(ka2, (R2, IN2), jnp.float32) * 0.05
    w_b2 = jax.random.normal(kbb2, (OUT2, R2), jnp.float32) * 0.05
    out2 = jax.block_until_ready(
        linear_lora_forward(x2, w_base2, b_base2, w_a2, w_b2, ALPHA))
    ref2 = _reference(x2, w_base2, b_base2, w_a2, w_b2, ALPHA)
    assert jnp.allclose(out2, ref2, atol=1e-4, rtol=1e-4)

    # 4) Larger shape exercises the K-tiled multi-step accumulation path
    #    (grid has >1 step along every axis).
    B3, S3, IN3, OUT3, R3 = 2, 24, 640, 384, 8
    kx3, kw3, kb3, ka3, kbb3 = jax.random.split(jax.random.PRNGKey(1), 5)
    x3 = jax.random.normal(kx3, (B3, S3, IN3), jnp.float32)
    w_base3 = jax.random.normal(kw3, (OUT3, IN3), jnp.float32) * 0.02
    b_base3 = jax.random.normal(kb3, (OUT3,), jnp.float32) * 0.02
    w_a3 = jax.random.normal(ka3, (R3, IN3), jnp.float32) * 0.02
    w_b3 = jax.random.normal(kbb3, (OUT3, R3), jnp.float32) * 0.02
    out3 = jax.block_until_ready(
        linear_lora_forward(x3, w_base3, b_base3, w_a3, w_b3, ALPHA,
                            tm_target=64, tn_target=128, tk_target=256))
    ref3 = _reference(x3, w_base3, b_base3, w_a3, w_b3, ALPHA)
    assert jnp.allclose(out3, ref3, atol=2e-4, rtol=2e-4)

    # TODO(synk): lora_fa only freezes w_a's gradient; it has no effect on the
    # forward pass implemented here.
    print("KERNEL_OK")
</pallas_src>

<mosaic_0001>
module attributes {stable_mosaic.version = 11 : i64} {
  func.func @_lora_kernel(%arg0: i32, %arg1: i32, %arg2: i32, %arg3: memref<16x128xf32, #tpu.memory_space<vmem>>, %arg4: memref<128x128xf32, #tpu.memory_space<vmem>>, %arg5: memref<1x128xf32, #tpu.memory_space<vmem>>, %arg6: memref<16x8xf32, #tpu.memory_space<vmem>>, %arg7: memref<8x128xf32, #tpu.memory_space<vmem>>, %arg8: memref<16x128xf32, #tpu.memory_space<vmem>>, %arg9: memref<16x128xf32, #tpu.memory_space<vmem>>) attributes {dimension_semantics = [#tpu.dimension_semantics<parallel>, #tpu.dimension_semantics<parallel>, #tpu.dimension_semantics<arbitrary>], iteration_bounds = array<i64: 1, 1, 1>, scalar_prefetch = 0 : i64, scratch_operands = 1 : i64, tpu.core_type = #tpu.core_type<tc>, window_params = [{transform_indices = @transform_0, window_bounds = array<i64: 16, 128>}, {transform_indices = @transform_1, window_bounds = array<i64: 128, 128>}, {transform_indices = @transform_2, window_bounds = array<i64: 1, 128>}, {transform_indices = @transform_3, window_bounds = array<i64: 16, 8>}, {transform_indices = @transform_4, window_bounds = array<i64: 8, 128>}, {transform_indices = @transform_5, window_bounds = array<i64: 16, 128>}]} {
    %c0_i32 = arith.constant 0 : i32
    %0 = arith.cmpi eq, %arg2, %c0_i32 : i32
    %1 = arith.extui %0 : i1 to i32
    %c0_i32_0 = arith.constant 0 : i32
    %2 = arith.cmpi ne, %1, %c0_i32_0 : i32
    scf.if %2 {
      %cst_10 = arith.constant 0.000000e+00 : f32
      %12 = vector.broadcast %cst_10 : f32 to vector<16x128xf32>
      %c0_11 = arith.constant 0 : index
      %c0_12 = arith.constant 0 : index
      %13 = vector.load %arg9[%c0_11, %c0_12] : memref<16x128xf32, #tpu.memory_space<vmem>>, vector<16x128xf32>
      tpu.vector_store %arg9[%c0_11, %c0_12], %12 {strides = array<i32>} : memref<16x128xf32, #tpu.memory_space<vmem>>, vector<16x128xf32>,
    } else {
    }
    %c0 = arith.constant 0 : index
    %c0_1 = arith.constant 0 : index
    %3 = vector.load %arg9[%c0, %c0_1] : memref<16x128xf32, #tpu.memory_space<vmem>>, vector<16x128xf32>
    %c0_2 = arith.constant 0 : index
    %c0_3 = arith.constant 0 : index
    %4 = vector.load %arg3[%c0_2, %c0_3] : memref<16x128xf32, #tpu.memory_space<vmem>>, vector<16x128xf32>
    %c0_4 = arith.constant 0 : index
    %c0_5 = arith.constant 0 : index
    %5 = vector.load %arg4[%c0_4, %c0_5] : memref<128x128xf32, #tpu.memory_space<vmem>>, vector<128x128xf32>
    %cst = arith.constant dense<0.000000e+00> : vector<16x128xf32>
    %6 = tpu.matmul %4, %5, %cst {dimension_numbers = #tpu.dot_dimension_numbers<[1], [0], [0], [1], [0, 0, 1, 1], [], []>} : vector<16x128xf32>, vector<128x128xf32>, vector<16x128xf32> -> vector<16x128xf32>
    %7 = arith.addf %3, %6 : vector<16x128xf32>
    %c0_6 = arith.constant 0 : index
    %c0_7 = arith.constant 0 : index
    %8 = vector.load %arg9[%c0_6, %c0_7] : memref<16x128xf32, #tpu.memory_space<vmem>>, vector<16x128xf32>
    tpu.vector_store %arg9[%c0_6, %c0_7], %7 {strides = array<i32>} : memref<16x128xf32, #tpu.memory_space<vmem>>, vector<16x128xf32>,
    %c0_i32_8 = arith.constant 0 : i32
    %9 = arith.cmpi eq, %arg2, %c0_i32_8 : i32
    %10 = arith.extui %9 : i1 to i32
    %c0_i32_9 = arith.constant 0 : i32
    %11 = arith.cmpi ne, %10, %c0_i32_9 : i32
    scf.if %11 {
      %c0_10 = arith.constant 0 : index
      %c0_11 = arith.constant 0 : index
      %12 = vector.load %arg6[%c0_10, %c0_11] : memref<16x8xf32, #tpu.memory_space<vmem>>, vector<16x8xf32>
      %c0_12 = arith.constant 0 : index
      %c0_13 = arith.constant 0 : index
      %13 = vector.load %arg7[%c0_12, %c0_13] : memref<8x128xf32, #tpu.memory_space<vmem>>, vector<8x128xf32>
      %cst_14 = arith.constant dense<0.000000e+00> : vector<16x128xf32>
      %14 = tpu.matmul %12, %13, %cst_14 {dimension_numbers = #tpu.dot_dimension_numbers<[1], [0], [0], [1], [0, 0, 1, 1], [], []>} : vector<16x8xf32>, vector<8x128xf32>, vector<16x128xf32> -> vector<16x128xf32>
      %c0_15 = arith.constant 0 : index
      %c0_16 = arith.constant 0 : index
      %15 = vector.load %arg9[%c0_15, %c0_16] : memref<16x128xf32, #tpu.memory_space<vmem>>, vector<16x128xf32>
      %c0_17 = arith.constant 0 : index
      %c0_18 = arith.constant 0 : index
      %16 = vector.load %arg5[%c0_17, %c0_18] : memref<1x128xf32, #tpu.memory_space<vmem>>, vector<1x128xf32>
      %17 = vector.broadcast %16 : vector<1x128xf32> to vector<16x128xf32>
      %18 = arith.addf %15, %17 : vector<16x128xf32>
      %19 = arith.addf %18, %14 : vector<16x128xf32>
      %c0_19 = arith.constant 0 : index
      %c0_20 = arith.constant 0 : index
      %20 = vector.load %arg8[%c0_19, %c0_20] : memref<16x128xf32, #tpu.memory_space<vmem>>, vector<16x128xf32>
      tpu.vector_store %arg8[%c0_19, %c0_20], %19 {strides = array<i32>} : memref<16x128xf32, #tpu.memory_space<vmem>>, vector<16x128xf32>,
    } else {
    }
    return
  }
  func.func @transform_0(%arg0: i32, %arg1: i32, %arg2: i32) -> (i32, i32) {
    %c0_i32 = arith.constant 0 : i32
    return %arg0, %arg2 : i32, i32
  }
  func.func @transform_1(%arg0: i32, %arg1: i32, %arg2: i32) -> (i32, i32) {
    %c0_i32 = arith.constant 0 : i32
    return %arg2, %arg1 : i32, i32
  }
  func.func @transform_2(%arg0: i32, %arg1: i32, %arg2: i32) -> (i32, i32) {
    %c0_i32 = arith.constant 0 : i32
    %c0_i32_0 = arith.constant 0 : i32
    return %c0_i32, %arg1 : i32, i32
  }
  func.func @transform_3(%arg0: i32, %arg1: i32, %arg2: i32) -> (i32, i32) {
    %c0_i32 = arith.constant 0 : i32
    %c0_i32_0 = arith.constant 0 : i32
    return %arg0, %c0_i32 : i32, i32
  }
  func.func @transform_4(%arg0: i32, %arg1: i32, %arg2: i32) -> (i32, i32) {
    %c0_i32 = arith.constant 0 : i32
    %c0_i32_0 = arith.constant 0 : i32
    return %c0_i32, %arg1 : i32, i32
  }
  func.func @transform_5(%arg0: i32, %arg1: i32, %arg2: i32) -> (i32, i32) {
    %c0_i32 = arith.constant 0 : i32
    return %arg0, %arg1 : i32, i32
  }
}

</mosaic_0001>

<bundles_post_ra>
// kernel: tpu_custom_call.1
= control target key start
LH: loop header
LB: loop body
LE: loop exit
PB: predicated region body
PF: predicated region fallthrough
CT: control target
= control target key end

     0   :  { %10 = vsyncpa [#allocation4], 0  ;;  %s298_s0 = inlined_call_operand.vmem [shape: f32[16,128], index: 0, kind: input, shape index: {}]   ;;  %s299_s1 = inlined_call_operand.hbm [shape: f32[128,128], index: 1, kind: input, shape index: {}]   ;;  %s300_s2 = inlined_call_operand.vmem [shape: f32[1,128], index: 2, kind: input, shape index: {}]   ;;  %s301_s3 = inlined_call_operand.vmem [shape: f32[16,8], index: 3, kind: input, shape index: {}]   ;;  %s302_s4 = inlined_call_operand.vmem [shape: f32[8,128], index: 4, kind: input, shape index: {}]   ;;  %s303_s5 = inlined_call_operand.hbm [shape: f32[16,128], index: 5, kind: output, shape index: {}]  }
   0x1   :  { %11 = vsyncpa [#allocation5], 0  ;;  %s18_s20 = sshll.u32 %s299_s1, 4  ;;  %s232_s21 = smov [#allocation3]   ;;  %s19_s20 = int_to_ptr.hbm [resolvable:$true] %s18_s20 }
   0x2   :  { %s20_s22 = sshll.u32 %s232_s21, 4  ;;  %s233_s23 = smov 128   ;;  %s21_s22 = int_to_ptr.vmem [resolvable:$true] %s20_s22 }
   0x3   :  { %s234_s24 = smov 8  }
   0x4   :  { %26 = dma.hbm_to_vmem [thread:$0]  %s19_s20, 2048, %s21_s22, [#allocation4], %s233_s23, %s233_s23, %s234_s24  }
   0x5   :  { %228 = dma.done.wait [#allocation4], 2048  }
   0x6   :  { %229 = vsyncadd [#allocation4], 4294965248  ;;  %v62_v0 = vld [vmem:[#allocation3 + $0x78] sm:$0xff]  ;;  %v61_v1 = vld [vmem:[#allocation3 + $0x70] sm:$0xff]  ;;  %vm96_vm0 = vcmask 64512   ;;  %s235_s9 = smov [#allocation6]  }
   0x7   :  { %63 = vmatpush.msra.mxu0 %v62_v0  ;;  %159 = vmatpush.msra.mxu2 %v62_v0  ;;  %v60_v2 = vld [vmem:[#allocation3 + $0x68] sm:$0xff]  ;;  %v59_v3 = vld [vmem:[#allocation3 + $0x60] sm:$0xff]  ;;  %v58_v5 = vld [vmem:[#allocation3 + $0x58] sm:$0xff]  ;;  %s142_s10 = sshll.u32 %s235_s9, 4  ;;  %s143_s10 = int_to_ptr.vmem [resolvable:$true] %s142_s10 }
   0x8   :  { %v95_v4 = vld [vmem:[%s302_s4] sm:$0xff]  ;;  %v57_v7 = vld [vmem:[#allocation3 + $0x50] sm:$0xff]  ;;  %v56_v8 = vld [vmem:[#allocation3 + $0x48] sm:$0xff] }
   0x9   :  { %64 = vmatpush.msra.mxu0 %v61_v1  ;;  %160 = vmatpush.msra.mxu2 %v61_v1  ;;  %v93_v6 = vld [vmem:[%s301_s3] sm:$0xff]  ;;  %v94_v10 = vld [vmem:[%s301_s3 + $0x8] sm:$0xff]  ;;  %v54_v11 = vld [vmem:[#allocation3 + $0x38] sm:$0xff] }
   0xa   :  { %118 = vmatpush.msra.mxu1 %v95_v4  ;;  %v55_v9 = vld [vmem:[#allocation3 + $0x40] sm:$0xff]  ;;  %v53_v12 = vld [vmem:[#allocation3 + $0x30] sm:$0xff]  ;;  %v52_v13 = vld [vmem:[#allocation3 + $0x28] sm:$0xff] }
   0xb   :  { %65 = vmatpush.msra.mxu0 %v60_v2  ;;  %161 = vmatpush.msra.mxu2 %v60_v2  ;;  %v51_v14 = vld [vmem:[#allocation3 + $0x20] sm:$0xff]  ;;  %v50_v15 = vld [vmem:[#allocation3 + $0x18] sm:$0xff]  ;;  %v49_v16 = vld [vmem:[#allocation3 + $0x10] sm:$0xff] }
   0xc   :  { %157 = vmatmul.msk.f32.vlgmr.msra.gmra.mxu1 %vm96_vm0, %v93_v6  ;;  %v48_v17 = vld [vmem:[#allocation3 + $0x8] sm:$0xff]  ;;  %v47_v18 = vld [vmem:[#allocation3] sm:$0xff] }
   0xd   :  { %66 = vmatpush.msra.mxu0 %v59_v3  ;;  %162 = vmatpush.msra.mxu2 %v59_v3  ;;  %v45_v19 = vld [vmem:[%s298_s0] sm:$0xff]  ;;  %v46_v20 = vld [vmem:[%s298_s0 + $0x8] sm:$0xff]  ;;  %s144_s0 = sshll.u32 %s303_s5, 4  ;;  %s145_s0 = int_to_ptr.hbm [resolvable:$true] %s144_s0 }
   0xe   :  { %v179_v22 = vld [vmem:[%s300_s2] ss:$0 sm:$0xff] }
   0xf   :  { %67 = vmatpush.msra.mxu0 %v58_v5  ;;  %163 = vmatpush.msra.mxu2 %v58_v5 }
  0x11   :  { %68 = vmatpush.msra.mxu0 %v57_v7  ;;  %164 = vmatpush.msra.mxu2 %v57_v7 }
  0x13   :  { %69 = vmatpush.msra.mxu0 %v56_v8  ;;  %165 = vmatpush.msra.mxu2 %v56_v8 }
  0x14   :  { %158 = vmatmul.msk.f32.gmra.mxu1 %vm96_vm0, %v94_v10 }
  0x15   :  { %70 = vmatpush.msra.mxu0 %v55_v9  ;;  %166 = vmatpush.msra.mxu2 %v55_v9 }
  0x17   :  { %71 = vmatpush.msra.mxu0 %v54_v11  ;;  %167 = vmatpush.msra.mxu2 %v54_v11 }
  0x19   :  { %72 = vmatpush.msra.mxu0 %v53_v12  ;;  %168 = vmatpush.msra.mxu2 %v53_v12 }
  0x1b   :  { %73 = vmatpush.msra.mxu0 %v52_v13  ;;  %169 = vmatpush.msra.mxu2 %v52_v13 }
  0x1d   :  { %74 = vmatpush.msra.mxu0 %v51_v14  ;;  %170 = vmatpush.msra.mxu2 %v51_v14 }
  0x1f   :  { %75 = vmatpush.msra.mxu0 %v50_v15  ;;  %171 = vmatpush.msra.mxu2 %v50_v15 }
  0x21   :  { %76 = vmatpush.msra.mxu0 %v49_v16  ;;  %172 = vmatpush.msra.mxu2 %v49_v16 }
  0x23   :  { %77 = vmatpush.msra.mxu0 %v48_v17  ;;  %173 = vmatpush.msra.mxu2 %v48_v17 }
  0x25   :  { %78 = vmatpush.msra.mxu0 %v47_v18  ;;  %174 = vmatpush.msra.mxu2 %v47_v18 }
  0x26   :  { %79 = vmatmul.f32.vlgmr.msra.gmra.mxu0 %v45_v19  ;;  %82 = vmatmul.f32.vlgmr.msra.gmra.mxu2 %v46_v20 }
  0x89   :  { %v120_v21 = vpop.f32.mrf.mxu1 }
  0x91   :  { %v123_v27 = vpop.f32.mrf.mxu1 }
  0xa3   :  { %v80_v23 = vpop.f32.mrf.mxu0 }
  0xa4   :  { %v132_v24 = vadd.f32 %v179_v22, %v80_v23 }
  0xa6   :  { %v134_v25 = vadd.f32 %v132_v24, %v120_v21 }
  0xa8   :  { %136 = vst [vmem:[#allocation6] sm:$0xff] %v134_v25 }
  0xa9   :  { %v83_v26 = vpop.f32.mrf.mxu2 }
  0xaa   :  { %v133_v28 = vadd.f32 %v179_v22, %v83_v26 }
  0xac   :  { %v135_v29 = vadd.f32 %v133_v28, %v123_v27 }
  0xae   :  { %137 = vst [vmem:[#allocation6 + $0x8] sm:$0xff] %v135_v29 }
  0xaf   :  { %150 = dma.vmem_to_hbm [thread:$0]  %s143_s10, 256, %s145_s0, [#allocation5], %s233_s23, %s233_s23, %s234_s24  }
  0xb0   :  { %230 = dma.done.wait [#allocation5], 256  }
  0xb1   :  { %231 = vsyncadd [#allocation5], 4294967040 }
  0xb2   :  { %155 = vsyncpa [#allocation4], 1 }
  0xb3   :  { %156 = vsyncpa [#allocation5], 1 }

</bundles_post_ra>
